<compile_context>
chip_gen: v7x
topology: tpu7x:2x2x1
jax: 0.10.0
libtpu: 0.0.40
codegen_flags: <defaults>
</compile_context>

<pallas_src>
import functools

import jax
import jax.numpy as jnp
from jax.experimental import pallas as pl
from jax.experimental.pallas import tpu as pltpu


def _pick_tile(dim, target, align):
    """Largest tile <= target that divides `dim` and is a multiple of `align`;
    falls back to the full dim (block == full array dim is always legal)."""
    if dim <= target:
        return dim
    t = (min(target, dim) // align) * align
    while t >= align:
        if dim % t == 0:
            return t
        t -= align
    return dim


def _vmem_limit_bytes():
    # Explicit VMEM budget instead of the generation-dependent default scope
    # (16 MiB v5e / 32 MiB v6e,v7x). 3/4 of physical leaves headroom for
    # Mosaic-internal scratch: ~96 MiB on v5e/v6e, ~48 MiB on v7x.
    try:
        phys = int(pltpu.get_tpu_info().vmem_capacity_bytes)
    except Exception:
        phys = 64 * 1024 * 1024
    return (phys * 3) // 4


# ---------------- tiled linear: x @ W + b ----------------

def _linear_kernel(x_ref, w_ref, b_ref, o_ref, acc_ref):
    @pl.when(pl.program_id(2) == 0)
    def _():
        acc_ref[...] = jnp.zeros(acc_ref.shape, jnp.float32)

    # bf16 MXU operands (bf16-native on v5e/v6e/v7x), f32 accumulation.
    acc_ref[...] += jnp.dot(x_ref[...].astype(jnp.bfloat16),
                            w_ref[...].astype(jnp.bfloat16),
                            preferred_element_type=jnp.float32)

    @pl.when(pl.program_id(2) == pl.num_programs(2) - 1)
    def _():
        o_ref[...] = (acc_ref[...] + b_ref[...].astype(jnp.float32)).astype(o_ref.dtype)


def linear(x2d, w, b, *, out_dtype=None, tm=256, tn=512, tk=512):
    """x2d: (M, Cin) @ w: (Cin, Cout) + b: (Cout,) -> (M, Cout) in out_dtype."""
    M, Cin = x2d.shape
    Cout = w.shape[1]
    out_dtype = out_dtype or x2d.dtype
    # TODO(synk): on v6e (128 MiB VMEM) larger tiles (tm=512, tn=1024) amortize
    # the ~0.35us per-step overhead further now that operands are bf16.
    tm = _pick_tile(M, tm, 8)
    tn = _pick_tile(Cout, tn, 128)
    tk = _pick_tile(Cin, tk, 128)
    grid = (M // tm, Cout // tn, Cin // tk)
    cost = pl.CostEstimate(
        flops=2 * M * Cin * Cout,
        transcendentals=0,
        bytes_accessed=(M * Cin * x2d.dtype.itemsize
                        + Cin * Cout * w.dtype.itemsize
                        + Cout * b.dtype.itemsize
                        + M * Cout * jnp.dtype(out_dtype).itemsize),
    )
    return pl.pallas_call(
        _linear_kernel,
        out_shape=jax.ShapeDtypeStruct((M, Cout), out_dtype),
        grid_spec=pltpu.PrefetchScalarGridSpec(
            num_scalar_prefetch=0,
            grid=grid,
            in_specs=[
                pl.BlockSpec((tm, tk), lambda i, j, k: (i, k)),
                pl.BlockSpec((tk, tn), lambda i, j, k: (k, j)),
                pl.BlockSpec((1, tn), lambda i, j, k: (0, j)),
            ],
            out_specs=pl.BlockSpec((tm, tn), lambda i, j, k: (i, j)),
            scratch_shapes=[pltpu.VMEM((tm, tn), jnp.float32)],
        ),
        compiler_params=pltpu.CompilerParams(
            dimension_semantics=("parallel", "parallel", "arbitrary"),
            vmem_limit_bytes=_vmem_limit_bytes()),
        cost_estimate=cost,
    )(x2d, w, b.reshape(1, Cout))


# ---------------- head-batched flash attention ----------------

_NEG_INF = -1e30   # finite "-inf": avoids inf-inf NaNs for fully-masked rows


def _attn_kernel(q_ref, kv_ref, mask_ref, o_ref, qh_sc, m_sc, l_sc, acc_sc, *,
                 num_heads, scale):
    H = num_heads
    D = q_ref.shape[3]
    C = H * D
    ki = pl.program_id(2)

    @pl.when(ki == 0)
    def _():
        m_sc[...] = jnp.full(m_sc.shape, _NEG_INF, jnp.float32)
        l_sc[...] = jnp.zeros(l_sc.shape, jnp.float32)
        acc_sc[...] = jnp.zeros(acc_sc.shape, jnp.float32)
        # q head-split + pre-scale hoisted out of the kv loop: q is resident
        # across ki, so the (tq,H,D)->(H,tq,D) relayout and the scale happen
        # once per q tile, not once per kv step.
        qh = pltpu.einshape("qhd->hqd", q_ref[0])                      # (H,tq,D)
        qh_sc[...] = (qh.astype(jnp.float32) * scale).astype(qh_sc.dtype)

    # k/v head split: one relayout per streamed kv tile (no per-head
    # slice+stack). kv column order matches torch's reshape(B,N,2,H,D).
    kv4 = kv_ref[0]                                                    # (tk,2,H,D) bf16
    kh = pltpu.einshape("khd->hkd", kv4[:, 0])                         # (H,tk,D)
    vh = pltpu.einshape("khd->hkd", kv4[:, 1])                         # (H,tk,D)

    mask = mask_ref[0, 0].astype(jnp.float32)                          # (tq,tk)

    # All heads in one batched bf16 MXU matmul, f32 accumulation.
    s = jnp.einsum('hqd,hkd->hqk', qh_sc[...], kh,
                   preferred_element_type=jnp.float32)                 # (H,tq,tk)
    s = s + mask[None, :, :]

    # Online softmax over the kv axis (exp stays f32: v5e EUP has no bf16 path).
    m_prev = m_sc[...]                                                 # (H,tq,1)
    m_new = jnp.maximum(m_prev, jnp.max(s, axis=-1, keepdims=True))
    alpha = jnp.exp(m_prev - m_new)
    p = jnp.exp(s - m_new)
    l_sc[...] = alpha * l_sc[...] + jnp.sum(p, axis=-1, keepdims=True)
    pv = jnp.einsum('hqk,hkd->hqd', p.astype(jnp.bfloat16), vh,
                    preferred_element_type=jnp.float32)                # (H,tq,D)
    acc_sc[...] = alpha * acc_sc[...] + pv
    m_sc[...] = m_new

    @pl.when(ki == pl.num_programs(2) - 1)
    def _():
        l = l_sc[...]
        l = jnp.where(l > 0.0, l, 1.0)     # guard fully-masked query rows
        # approx reciprocal -> EUP slot; switch to approx=False if bit-level
        # closeness to the PyTorch softmax division is required.
        inv_l = pl.reciprocal(l, approx=True)
        out = (acc_sc[...] * inv_l).astype(o_ref.dtype)                # (H,tq,D)
        # One lane-dense (tq, C) store instead of H masked D-wide stores.
        o_ref[0] = jnp.concatenate([out[h] for h in range(H)], axis=-1)


def mha_attention(q_bnhd, kv_bn2hd, mask_b1nn, num_heads, scale, *, tq=256, tk=256):
    """q: (B,N,H,D), kv: (B,N,2,H,D), mask: (B,1,N,N) -> (B,N,C=H*D)."""
    B, N, H, D = q_bnhd.shape
    assert H == num_heads
    C = H * D
    # tk=256 keeps per-step f32 score/prob temporaries + double buffers inside
    # the v7x (64 MiB) / v5e budgets; v6e has headroom for larger kv tiles.
    tq = _pick_tile(N, tq, 8)
    tk = _pick_tile(N, tk, 128)
    kv_steps = N // tk
    grid = (B, N // tq, kv_steps)

    # Deeper buffering on the two streamed inputs hides exposed DMA (mostly a
    # v5e HBM-bandwidth concern); only when there are enough kv steps.
    stream_kwargs = {"pipeline_mode": pl.Buffered(3)} if kv_steps >= 4 else {}

    cost = pl.CostEstimate(
        flops=4 * B * H * N * N * D,
        transcendentals=B * H * N * N,
        bytes_accessed=(B * N * C * q_bnhd.dtype.itemsize
                        + B * N * 2 * C * kv_bn2hd.dtype.itemsize
                        + B * N * N * mask_b1nn.dtype.itemsize
                        + B * N * C * q_bnhd.dtype.itemsize),
    )
    kernel = functools.partial(_attn_kernel, num_heads=H, scale=float(scale))
    return pl.pallas_call(
        kernel,
        out_shape=jax.ShapeDtypeStruct((B, N, C), q_bnhd.dtype),
        grid_spec=pltpu.PrefetchScalarGridSpec(
            num_scalar_prefetch=0,
            grid=grid,
            in_specs=[
                pl.BlockSpec((1, tq, H, D), lambda b, qi, ki: (b, qi, 0, 0)),
                pl.BlockSpec((1, tk, 2, H, D), lambda b, qi, ki: (b, ki, 0, 0, 0),
                             **stream_kwargs),
                pl.BlockSpec((1, 1, tq, tk), lambda b, qi, ki: (b, 0, qi, ki),
                             **stream_kwargs),
            ],
            out_specs=pl.BlockSpec((1, tq, C), lambda b, qi, ki: (b, qi, 0)),
            scratch_shapes=[
                pltpu.VMEM((H, tq, D), q_bnhd.dtype),   # hoisted scaled q heads
                pltpu.VMEM((H, tq, 1), jnp.float32),    # running max
                pltpu.VMEM((H, tq, 1), jnp.float32),    # running denom
                pltpu.VMEM((H, tq, D), jnp.float32),    # output accumulator
            ],
        ),
        compiler_params=pltpu.CompilerParams(
            # b and qi shard across the v7x 2 TCs; ki carries the online-softmax
            # accumulators so it stays "arbitrary" (innermost).
            dimension_semantics=("parallel", "parallel", "arbitrary"),
            vmem_limit_bytes=_vmem_limit_bytes()),
        cost_estimate=cost,
    )(q_bnhd, kv_bn2hd, mask_b1nn)


# ---------------- CrossAttention forward ----------------

def cross_attention_forward(q_in, kv_in, mask, params, num_heads):
    B, N, C = q_in.shape
    D = C // num_heads
    scale = D ** (-0.5)

    # Projections: bf16 MXU matmuls with f32 accumulation. Activations are kept
    # bf16 between kernels to halve the q/kv/attn-out HBM traffic.
    q_proj = linear(q_in.reshape(B * N, C), params["wq"], params["bq"],
                    out_dtype=jnp.bfloat16)
    kv_proj = linear(kv_in.reshape(B * N, C), params["wkv"], params["bkv"],
                     out_dtype=jnp.bfloat16)

    # Free (metadata-only) head-split reshapes; column order matches torch's
    # reshape(B,N,{1,2},H,D). No HBM transposes.
    q4 = q_proj.reshape(B, N, num_heads, D)
    kv5 = kv_proj.reshape(B, N, 2, num_heads, D)

    # bf16 mask halves the dominant O(N^2) HBM stream (ideally the caller
    # already produces it in bf16 so this cast fuses away); the kernel adds it
    # to the logits in f32.
    mask_bf16 = mask.astype(jnp.bfloat16)

    x = mha_attention(q4, kv5, mask_bf16, num_heads, scale)

    # Output projection back to the module's dtype.
    x = linear(x.reshape(B * N, C), params["wproj"], params["bproj"],
               out_dtype=q_in.dtype)
    # attn_drop / proj_drop have p=0.0 -> identity in this configuration.
    return x.reshape(B, N, C)


# ---------------- Parameter init + example run ----------------

def init_params(key, dim, qkv_bias=False):
    k1, k2, k3, k4 = jax.random.split(key, 4)
    std = 0.02
    return {
        # stored already transposed: (Cin, Cout)
        "wq": jax.random.normal(k1, (dim, dim), jnp.float32) * std,
        "bq": jnp.zeros((dim,), jnp.float32),          # qkv_bias=False -> zero
        "wkv": jax.random.normal(k2, (dim, 2 * dim), jnp.float32) * std,
        "bkv": jnp.zeros((2 * dim,), jnp.float32),     # qkv_bias=False -> zero
        "wproj": jax.random.normal(k3, (dim, dim), jnp.float32) * std,
        "bproj": jax.random.normal(k4, (dim,), jnp.float32) * std,
    }


if __name__ == "__main__":
    B, N, C = 2, 8, 32
    num_heads = 8

    key = jax.random.PRNGKey(0)
    kq, kkv, kmask, kparam = jax.random.split(key, 4)

    q_in = jax.random.normal(kq, (B, N, C), jnp.float32)
    kv_in = jax.random.normal(kkv, (B, N, C), jnp.float32)
    mask = jax.random.normal(kmask, (B, 1, N, N), jnp.float32)  # added to logits

    params = init_params(kparam, C, qkv_bias=False)

    out = cross_attention_forward(q_in, kv_in, mask, params, num_heads)
    jax.block_until_ready(out)
    assert out.shape == (B, N, C)
    print("KERNEL_OK")
</pallas_src>

<mosaic_0001>
module attributes {stable_mosaic.version = 11 : i64} {
  func.func @_linear_kernel(%arg0: i32, %arg1: i32, %arg2: i32, %arg3: memref<16x32xf32, #tpu.memory_space<vmem>>, %arg4: memref<32x32xf32, #tpu.memory_space<vmem>>, %arg5: memref<1x32xf32, #tpu.memory_space<vmem>>, %arg6: memref<16x32xbf16, #tpu.memory_space<vmem>>, %arg7: memref<16x32xf32, #tpu.memory_space<vmem>>) attributes {dimension_semantics = [#tpu.dimension_semantics<parallel>, #tpu.dimension_semantics<parallel>, #tpu.dimension_semantics<arbitrary>], iteration_bounds = array<i64: 1, 1, 1>, scalar_prefetch = 0 : i64, scratch_operands = 1 : i64, tpu.core_type = #tpu.core_type<tc>, window_params = [{transform_indices = @transform_0, window_bounds = array<i64: 16, 32>}, {transform_indices = @transform_1, window_bounds = array<i64: 32, 32>}, {transform_indices = @transform_2, window_bounds = array<i64: 1, 32>}, {transform_indices = @transform_3, window_bounds = array<i64: 16, 32>}]} {
    %c0_i32 = arith.constant 0 : i32
    %0 = arith.cmpi eq, %arg2, %c0_i32 : i32
    %1 = arith.extui %0 : i1 to i32
    %c0_i32_0 = arith.constant 0 : i32
    %2 = arith.cmpi ne, %1, %c0_i32_0 : i32
    scf.if %2 {
      %cst_10 = arith.constant 0.000000e+00 : f32
      %14 = vector.broadcast %cst_10 : f32 to vector<16x32xf32>
      %c0_11 = arith.constant 0 : index
      %c0_12 = arith.constant 0 : index
      %15 = vector.load %arg7[%c0_11, %c0_12] : memref<16x32xf32, #tpu.memory_space<vmem>>, vector<16x32xf32>
      tpu.vector_store %arg7[%c0_11, %c0_12], %14 {strides = array<i32>} : memref<16x32xf32, #tpu.memory_space<vmem>>, vector<16x32xf32>,
    } else {
    }
    %c0 = arith.constant 0 : index
    %c0_1 = arith.constant 0 : index
    %3 = vector.load %arg7[%c0, %c0_1] : memref<16x32xf32, #tpu.memory_space<vmem>>, vector<16x32xf32>
    %c0_2 = arith.constant 0 : index
    %c0_3 = arith.constant 0 : index
    %4 = vector.load %arg3[%c0_2, %c0_3] : memref<16x32xf32, #tpu.memory_space<vmem>>, vector<16x32xf32>
    %5 = arith.truncf %4 : vector<16x32xf32> to vector<16x32xbf16>
    %c0_4 = arith.constant 0 : index
    %c0_5 = arith.constant 0 : index
    %6 = vector.load %arg4[%c0_4, %c0_5] : memref<32x32xf32, #tpu.memory_space<vmem>>, vector<32x32xf32>
    %7 = arith.truncf %6 : vector<32x32xf32> to vector<32x32xbf16>
    %cst = arith.constant dense<0.000000e+00> : vector<16x32xf32>
    %8 = tpu.matmul %5, %7, %cst {dimension_numbers = #tpu.dot_dimension_numbers<[1], [0], [0], [1], [0, 0, 1, 1], [], []>} : vector<16x32xbf16>, vector<32x32xbf16>, vector<16x32xf32> -> vector<16x32xf32>
    %9 = arith.addf %3, %8 : vector<16x32xf32>
    %c0_6 = arith.constant 0 : index
    %c0_7 = arith.constant 0 : index
    %10 = vector.load %arg7[%c0_6, %c0_7] : memref<16x32xf32, #tpu.memory_space<vmem>>, vector<16x32xf32>
    tpu.vector_store %arg7[%c0_6, %c0_7], %9 {strides = array<i32>} : memref<16x32xf32, #tpu.memory_space<vmem>>, vector<16x32xf32>,
    %c0_i32_8 = arith.constant 0 : i32
    %11 = arith.cmpi eq, %arg2, %c0_i32_8 : i32
    %12 = arith.extui %11 : i1 to i32
    %c0_i32_9 = arith.constant 0 : i32
    %13 = arith.cmpi ne, %12, %c0_i32_9 : i32
    scf.if %13 {
      %c0_10 = arith.constant 0 : index
      %c0_11 = arith.constant 0 : index
      %14 = vector.load %arg7[%c0_10, %c0_11] : memref<16x32xf32, #tpu.memory_space<vmem>>, vector<16x32xf32>
      %c0_12 = arith.constant 0 : index
      %c0_13 = arith.constant 0 : index
      %15 = vector.load %arg5[%c0_12, %c0_13] : memref<1x32xf32, #tpu.memory_space<vmem>>, vector<1x32xf32>
      %16 = vector.broadcast %15 : vector<1x32xf32> to vector<16x32xf32>
      %17 = arith.addf %14, %16 : vector<16x32xf32>
      %18 = arith.truncf %17 : vector<16x32xf32> to vector<16x32xbf16>
      %c0_14 = arith.constant 0 : index
      %c0_15 = arith.constant 0 : index
      %19 = vector.load %arg6[%c0_14, %c0_15] : memref<16x32xbf16, #tpu.memory_space<vmem>>, vector<16x32xbf16>
      tpu.vector_store %arg6[%c0_14, %c0_15], %18 {strides = array<i32>} : memref<16x32xbf16, #tpu.memory_space<vmem>>, vector<16x32xbf16>,
    } else {
    }
    return
  }
  func.func @transform_0(%arg0: i32, %arg1: i32, %arg2: i32) -> (i32, i32) {
    %c0_i32 = arith.constant 0 : i32
    return %arg0, %arg2 : i32, i32
  }
  func.func @transform_1(%arg0: i32, %arg1: i32, %arg2: i32) -> (i32, i32) {
    %c0_i32 = arith.constant 0 : i32
    return %arg2, %arg1 : i32, i32
  }
  func.func @transform_2(%arg0: i32, %arg1: i32, %arg2: i32) -> (i32, i32) {
    %c0_i32 = arith.constant 0 : i32
    %c0_i32_0 = arith.constant 0 : i32
    return %c0_i32, %arg1 : i32, i32
  }
  func.func @transform_3(%arg0: i32, %arg1: i32, %arg2: i32) -> (i32, i32) {
    %c0_i32 = arith.constant 0 : i32
    return %arg0, %arg1 : i32, i32
  }
}

</mosaic_0001>

<bundles_post_ra>
// kernel: tpu_custom_call.1
= control target key start
LH: loop header
LB: loop body
LE: loop exit
PB: predicated region body
PF: predicated region fallthrough
CT: control target
= control target key end

     0   :  { %8 = vsyncpa [#allocation4], 0  ;;  %s325_s0 = inlined_call_operand.hbm [shape: f32[16,32], index: 0, kind: input, shape index: {}]   ;;  %s326_s1 = inlined_call_operand.hbm [shape: f32[32,32], index: 1, kind: input, shape index: {}]   ;;  %s327_s2 = inlined_call_operand.vmem [shape: f32[1,32], index: 2, kind: input, shape index: {}]   ;;  %s328_s3 = inlined_call_operand.hbm [shape: bf16[16,32], index: 3, kind: output, shape index: {}]  }
   0x1   :  { %9 = vsyncpa [#allocation7], 0 }
   0x2   :  { %10 = vsyncpa [#allocation5], 0  ;;  %s252_s12 = smov [#allocation3]   ;;  %s180_s16 = scalar_lea.hbm %s325_s0, 256 }
   0x3   :  { %s16_s13 = sshll.u32 %s252_s12, 4  ;;  %p181_p0 = scmp.ne.s32.totalorder %s325_s0, %s180_s16  ;;  %s17_s13 = int_to_ptr.vmem [resolvable:$true] %s16_s13 }
   0x4   :  { %p184_p1 = scmp.lt.u32.totalorder %s180_s16, %s325_s0 }
   0x6   :  { %p186_p2 = pnand %p184_p1, %p181_p0 }
   0x8   :  { %189 = shalt.err (!%p186_p2)
}
   0x9   :  { %s190_s21 = scalar_lea.vmem %s17_s13, 256  ;;  %p195_p4 = scmp.lt.s32.totalorder %s17_s13, %s17_s13 }
   0xa   :  { %p191_p3 = scmp.ne.s32.totalorder %s17_s13, %s190_s21  ;;  %p196_p5 = scmp.lt.s32.totalorder %s190_s21, %s190_s21 }
   0xc   :  { %p197_p6 = por %p196_p5, %p195_p4 }
   0xe   :  { %p198_p7 = pnand %p197_p6, %p191_p3 }
  0x10   :  { %201 = shalt.err (!%p198_p7)
}
  0x11   :  { %s253_s22 = smov 128   ;;  %s254_s23 = smov 8  }
  0x12   :  { %22 = dma.hbm_to_vmem [thread:$0]  %s325_s0, 256, %s17_s13, [#allocation4], %s253_s22, %s253_s22, %s254_s23  }
  0x13   :  { %s255_s26 = smov [#allocation6]   ;;  %s202_s30 = scalar_lea.hbm %s326_s1, 512 }
  0x14   :  { %s28_s27 = sshll.u32 %s255_s26, 4  ;;  %p203_p8 = scmp.ne.s32.totalorder %s326_s1, %s202_s30  ;;  %s29_s27 = int_to_ptr.vmem [resolvable:$true] %s28_s27 }
  0x15   :  { %p206_p9 = scmp.lt.u32.totalorder %s202_s30, %s326_s1 }
  0x17   :  { %p208_p10 = pnand %p206_p9, %p203_p8 }
  0x19   :  { %211 = shalt.err (!%p208_p10)
}
  0x1a   :  { %s212_s8 = scalar_lea.vmem %s29_s27, 512  ;;  %p217_p12 = scmp.lt.s32.totalorder %s29_s27, %s29_s27 }
  0x1b   :  { %p213_p11 = scmp.ne.s32.totalorder %s29_s27, %s212_s8  ;;  %p218_p13 = scmp.lt.s32.totalorder %s212_s8, %s212_s8 }
  0x1d   :  { %p219_p0 = por %p218_p13, %p217_p12 }
  0x1f   :  { %p220_p1 = pnand %p219_p0, %p213_p11 }
  0x21   :  { %223 = shalt.err (!%p220_p1)
}
  0x22   :  { %34 = dma.hbm_to_vmem [thread:$0]  %s326_s1, 512, %s29_s27, [#allocation7], %s253_s22, %s253_s22, %s254_s23  }
  0x23   :  { %246 = dma.done.wait [#allocation4], 256  }
  0x24   :  { %247 = vsyncadd [#allocation4], 4294967040 }
  0x25   :  { %248 = dma.done.wait [#allocation7], 512  }
  0x26   :  { %249 = vsyncadd [#allocation7], 4294966784  ;;  %vm48_vm0 = vcmask 261120   ;;  %v256_v0 = vmov 0.0   ;;  %vm257_vm1 = vmmov 0   ;;  %v56_v1 = vld [vmem:[#allocation6] sm:$0xff] }
  0x27   :  { %163 = vmatprep.subr.bf16.mxu0 %v256_v0  ;;  %167 = vmatprep.mubr.msk.bf16.mxu0 %vm257_vm1, %v256_v0  ;;  %49 = vst.msk [vmem:[#allocation2] sm:$0xff] %vm48_vm0, %v256_v0  ;;  %50 = vst.msk [vmem:[#allocation2 + $0x8] sm:$0xff] %vm48_vm0, %v256_v0  ;;  %v57_v2 = vld [vmem:[#allocation6 + $0x8] sm:$0xff]  ;;  %v58_v3 = vld [vmem:[#allocation6 + $0x10] sm:$0xff]  ;;  %s258_s11 = smov [#allocation8]   ;;  %vm133_vm2 = vcmask 257024  }
  0x28   :  { %v60_v4 = vpack.c.bf16 %v57_v2, %v56_v1  ;;  %v59_v5 = vld [vmem:[#allocation6 + $0x18] sm:$0xff]  ;;  %v53_v7 = vld [vmem:[#allocation3] sm:$0xff]  ;;  %v155_v18 = vld [vmem:[%s327_s2] ss:$0 sm:$0xff]  ;;  %s141_s12 = sshll.u32 %s258_s11, 4  ;;  %s142_s12 = int_to_ptr.vmem [resolvable:$true] %s141_s12 }
  0x29   :  { %v61_v6 = vpack.c.bf16 %v59_v5, %v58_v3  ;;  %v54_v8 = vld [vmem:[#allocation3 + $0x8] sm:$0xff]  ;;  %s224_s13 = scalar_lea.vmem %s142_s12, 128  ;;  %p229_p3 = scmp.lt.s32.totalorder %s142_s12, %s142_s12 }
  0x2a   :  { %164 = vmatpush3.bf16.msra.mxu0 %v60_v4  ;;  %v55_v9 = vpack.c.bf16 %v54_v8, %v53_v7  ;;  %p225_p2 = scmp.ne.s32.totalorder %s142_s12, %s224_s13  ;;  %p230_p4 = scmp.lt.s32.totalorder %s224_s13, %s224_s13 }
  0x2b   :  { %165 = vmatprep.subr.bf16.mxu0 %v256_v0 }
  0x2c   :  { %p231_p5 = por %p230_p4, %p229_p3 }
  0x2e   :  { %166 = vmatpush3.bf16.msra.mxu0 %v61_v6  ;;  %v51_v10 = vld [vmem:[#allocation2] sm:$0xff]  ;;  %v52_v12 = vld [vmem:[#allocation2 + $0x8] sm:$0xff]  ;;  %p232_p6 = pnand %p231_p5, %p225_p2 }
  0x31   :  { %168 = vmatmul.mubr.msk.bf16.vlgmr.msra.gmra.mrb[0].mxu0 %vm48_vm0, %v55_v9 }
 0x104   :  { %v100_v11 = vpop.f32.mrb[0].mxu0 }
 0x105   :  { %v107_v13 = vadd.f32 %v100_v11, %v51_v10  ;;  %v169_v14 = vpop.f32.mrb[1].mxu0 }
 0x106   :  { %v103_v15 = vpop.f32.mrb[2].mxu0 }
 0x107   :  { %109 = vst.msk [vmem:[#allocation2] sm:$0xff] %vm48_vm0, %v107_v13  ;;  %v108_v16 = vadd.f32 %v103_v15, %v52_v12  ;;  %v170_v17 = vpop.f32.mrb[3].mxu0 }
 0x109   :  { %110 = vst.msk [vmem:[#allocation2 + $0x8] sm:$0xff] %vm48_vm0, %v108_v16 }
 0x10e   :  { %v114_v19 = vld [vmem:[#allocation2] sm:$0xff] }
 0x10f   :  { %v123_v20 = vadd.f32 %v155_v18, %v114_v19 }
 0x110   :  { %v115_v21 = vld [vmem:[#allocation2 + $0x8] sm:$0xff] }
 0x111   :  { %v124_v22 = vadd.f32 %v155_v18, %v115_v21  ;;  %v158_v23 = vpack.c.bf16 %v123_v20, %v123_v20 }
 0x113   :  { %v159_v24 = vpack.c.bf16 %v124_v22, %v124_v22  ;;  %134 = vst.msk [vmem:[#allocation8] sm:$0xf] %vm133_vm2, %v158_v23 }
 0x115   :  { %135 = vst.msk [vmem:[#allocation8 + $0x4] sm:$0xf] %vm133_vm2, %v159_v24 }
 0x116   :  { %235 = shalt.err (!%p232_p6)
}
 0x117   :  { %s236_s15 = scalar_lea.hbm %s328_s3, 128 }
 0x118   :  { %p237_p7 = scmp.ne.s32.totalorder %s328_s3, %s236_s15  ;;  %p240_p8 = scmp.lt.u32.totalorder %s236_s15, %s328_s3 }
 0x11a   :  { %p242_p9 = pnand %p240_p8, %p237_p7 }
 0x11c   :  { %245 = shalt.err (!%p242_p9)
}
 0x11d   :  { %s259_s20 = smov 64   ;;  %s260_s21 = smov 4  }
 0x11e   :  { %147 = dma.vmem_to_hbm [thread:$0]  %s142_s12, 128, %s328_s3, [#allocation5], %s259_s20, %s259_s20, %s260_s21  }
 0x11f   :  { %250 = dma.done.wait [#allocation5], 128  }
 0x120   :  { %251 = vsyncadd [#allocation5], 4294967168 }
 0x121   :  { %151 = vsyncpa [#allocation4], 1 }
 0x122   :  { %152 = vsyncpa [#allocation7], 1 }
 0x123   :  { %153 = vsyncpa [#allocation5], 1 }

</bundles_post_ra>
